<compile_context>
chip_gen: v7x
topology: tpu7x:2x2x1
jax: 0.10.0
libtpu: 0.0.40
codegen_flags: <defaults>
</compile_context>

<pallas_src>
import functools

import jax
import jax.numpy as jnp
from jax.experimental import pallas as pl
from jax.experimental.pallas import tpu as pltpu


def _round_up(n, m):
    return ((n + m - 1) // m) * m


def _vmem_limit_bytes(estimate_bytes):
    # 2x headroom for Mosaic temporaries, floored at the v6e/v7x default scoped
    # limit and capped below v7x's 64 MiB per-TC physical VMEM.
    return int(min(64 * 1024 * 1024, max(32 * 1024 * 1024, 2 * estimate_bytes)))


def _pick_row_tile(batch, want, sublane):
    """Row tile aligned to `sublane`, capped at the batch, preferring >= 2 row
    blocks so dimension_semantics=("parallel", ...) can use v7x's second TC."""
    tb = _round_up(min(want, max(batch, sublane)), sublane)
    if batch >= 2 * sublane:
        half = _round_up(-(-batch // 2), sublane)
        tb = min(tb, half)
    return tb


# ---------------------------------------------------------------------------
# Label-smoothing cross entropy (IDLoss; plain CrossEntropyLoss when eps == 0)
#
#   loss_i = (1-eps)*(lse_i - logit[i, label_i]) + (eps/C)*(C*lse_i - sum_c logit[i,c])
#
# computed with an online logsumexp over class blocks -> no (B, C) one_hot /
# log_prob temporaries and bounded VMEM for any C.
# ---------------------------------------------------------------------------
def _ce_kernel(labels_ref, logits_ref, out_ref, m_sc, l_sc, s_sc, t_sc,
               *, num_classes, tile_c, epsilon):
    j = pl.program_id(1)
    n_cls_blocks = pl.num_programs(1)

    @pl.when(j == 0)
    def _():
        m_sc[...] = jnp.full_like(m_sc, -1e30)     # running max
        l_sc[...] = jnp.zeros_like(l_sc)           # running sum exp(logit - m)
        s_sc[...] = jnp.zeros_like(s_sc)           # running sum of logits (eps term)
        t_sc[...] = jnp.zeros_like(t_sc)           # logit at the label column

    logits = logits_ref[...].astype(jnp.float32)                    # (tb, tc)
    labels = labels_ref[...]                                        # (tb, 1) int32

    cls = jax.lax.broadcasted_iota(jnp.int32, logits.shape, 1) + j * tile_c
    valid_col = cls < num_classes                                   # mask class padding

    masked = jnp.where(valid_col, logits, -1e30)
    block_max = jnp.max(masked, axis=1, keepdims=True)              # (tb, 1), finite
    m_old = m_sc[...]
    m_new = jnp.maximum(m_old, block_max)
    alpha = jnp.exp(m_old - m_new)                                  # 0 on first block
    l_sc[...] = l_sc[...] * alpha + jnp.sum(jnp.exp(masked - m_new),
                                            axis=1, keepdims=True)
    m_sc[...] = m_new

    # logit at the label column (labels of padded rows are -1 -> never match).
    t_sc[...] = t_sc[...] + jnp.sum(jnp.where(cls == labels, logits, 0.0),
                                    axis=1, keepdims=True)
    if epsilon != 0.0:
        s_sc[...] = s_sc[...] + jnp.sum(jnp.where(valid_col, logits, 0.0),
                                        axis=1, keepdims=True)

    @pl.when(j == n_cls_blocks - 1)
    def _():
        lse = m_sc[...] + jnp.log(l_sc[...])                        # (tb, 1)
        nll = lse - t_sc[...]
        if epsilon != 0.0:
            uniform_nll = num_classes * lse - s_sc[...]             # = -sum_c log p_c
            per_row = (1.0 - epsilon) * nll + (epsilon / num_classes) * uniform_nll
        else:
            per_row = nll
        valid_row = (labels >= 0).astype(jnp.float32)               # mask padded rows
        out_ref[...] = per_row * valid_row


def id_loss(logits, labels, *, num_classes, epsilon=0.0, tile_b=256, tile_c=None):
    """Pallas IDLoss / CE: logits (B, C), labels (B,) -> scalar f32."""
    B, C = logits.shape
    assert num_classes == C, f"num_classes={num_classes} must equal logits.shape[1]={C}"
    itemsize = jnp.dtype(logits.dtype).itemsize
    sublane = 16 if itemsize == 2 else 8           # bf16 packs 16 rows / vreg

    tb = _pick_row_tile(B, tile_b, sublane)
    B_pad = _round_up(B, tb)
    if tile_c is None:
        tile_c = min(1024, _round_up(C, 128))
    tile_c = _round_up(tile_c, 128)
    C_pad = _round_up(C, tile_c)                   # every class block has >=1 valid col
    n_row_blocks = B_pad // tb
    n_cls_blocks = C_pad // tile_c

    labels2d = labels.reshape(B, 1).astype(jnp.int32)
    if B_pad != B:
        labels2d = jnp.pad(labels2d, ((0, B_pad - B), (0, 0)), constant_values=-1)
    if (B_pad, C_pad) != (B, C):
        logits = jnp.pad(logits, ((0, B_pad - B), (0, C_pad - C)))

    # VMEM budget: logits (double buffered) + f32 temporaries + labels/out/scratch
    # (padded to lane width).
    lane_bytes = 128 * 4
    vmem_est = (2 * tb * tile_c * itemsize + 2 * tb * tile_c * 4
                + 2 * tb * lane_bytes + 2 * tb * lane_bytes + 4 * tb * lane_bytes)
    cost = pl.CostEstimate(
        flops=6 * B_pad * C_pad,
        transcendentals=B_pad * C_pad,
        bytes_accessed=B_pad * C_pad * itemsize + 2 * B_pad * 4,
    )

    # TODO(synk): on v6e/v7x the exp chain could stay bf16 (f32 accumulate) for
    # ~2x EUP throughput; kept f32 here (v5e has no bf16 EUP, needs validation).
    per_row = pl.pallas_call(
        functools.partial(_ce_kernel, num_classes=num_classes, tile_c=tile_c,
                          epsilon=float(epsilon)),
        out_shape=jax.ShapeDtypeStruct((B_pad, 1), jnp.float32),
        grid=(n_row_blocks, n_cls_blocks),
        in_specs=[
            pl.BlockSpec((tb, 1), lambda i, j: (i, 0)),        # labels (row block)
            pl.BlockSpec((tb, tile_c), lambda i, j: (i, j)),   # logits tile
        ],
        out_specs=pl.BlockSpec((tb, 1), lambda i, j: (i, 0)),  # per-row loss
        scratch_shapes=[pltpu.VMEM((tb, 1), jnp.float32)] * 4,
        compiler_params=pltpu.CompilerParams(
            dimension_semantics=("parallel", "arbitrary"),
            vmem_limit_bytes=_vmem_limit_bytes(vmem_est),
        ),
        cost_estimate=cost,
    )(labels2d, logits)
    return jnp.sum(per_row) * (1.0 / B)


# ---------------------------------------------------------------------------
# Batch-hard triplet loss
# ---------------------------------------------------------------------------
def _triplet_kernel(row_lab_ref, col_lab_ref, col_sq_ref, feat_row_ref,
                    feat_all_ref, out_ref, *, margin):
    x = feat_row_ref[...]                          # (tb, D) native dtype (bf16 stays bf16)
    y = feat_all_ref[...]                          # (B_pad, D) resident block
    row_lab = row_lab_ref[...]                     # (tb, 1) int32
    col_lab = col_lab_ref[...]                     # (1, B_pad) int32
    col_sq = col_sq_ref[...]                       # (1, B_pad) f32

    # Gram on the MXU in the native dtype with f32 accumulation.
    # (f32 inputs use default MXU precision; tolerance documented in the tests.)
    gram = jax.lax.dot_general(
        x, y, (((1,), (1,)), ((), ())), preferred_element_type=jnp.float32
    )                                              # (tb, B_pad)

    xf = x.astype(jnp.float32)
    row_sq = jnp.sum(xf * xf, axis=1, keepdims=True)               # (tb, 1), in-kernel

    # ||x_i - y_j||^2, clamped like the reference.
    dist2 = jnp.maximum(row_sq + col_sq - 2.0 * gram, 1e-12)       # (tb, B_pad)

    row_valid = row_lab >= 0                                       # padded anchors
    col_valid = col_lab >= 0                                       # padded candidates
    same = row_lab == col_lab
    is_pos = jnp.logical_and(same, col_valid)
    is_neg = jnp.logical_and(jnp.logical_not(same), col_valid)

    # Batch-hard over squared distances; sqrt only on the two (tb, 1) winners.
    d2_ap = jnp.max(jnp.where(is_pos, dist2, -1.0), axis=1, keepdims=True)
    d2_an = jnp.min(jnp.where(is_neg, dist2, 3.0e38), axis=1, keepdims=True)
    dist_ap = jnp.sqrt(jnp.maximum(d2_ap, 1e-12))
    dist_an = jnp.sqrt(d2_an)

    hinge = jnp.maximum(dist_ap - dist_an + margin, 0.0)           # (tb, 1)
    out_ref[...] = jnp.where(row_valid, hinge, 0.0)


def triplet_loss(features, labels, *, margin=0.3, tile_b=256):
    """Pallas batch-hard triplet loss: features (B, D), labels (B,) -> scalar f32."""
    B, D = features.shape
    itemsize = jnp.dtype(features.dtype).itemsize

    # Lane-align the distance-matrix / MXU-N dimension to 128 independent of tile_b.
    B_pad = _round_up(B, 128)
    if B_pad >= 512 and tile_b >= 256 and B_pad % 256 == 0:
        tb = 256                                   # full-width MXU rows on v6e/v7x, >=2 blocks
    elif B_pad >= 256:
        tb = 128
    else:
        tb = B_pad                                 # single 128-row block for tiny batches
    n_blocks = B_pad // tb

    labels = labels.astype(jnp.int32)
    feats = features
    if B_pad != B:
        feats = jnp.pad(feats, ((0, B_pad - B), (0, 0)))
        labels = jnp.pad(labels, (0, B_pad - B), constant_values=-1)

    row_lab = labels.reshape(B_pad, 1)
    col_lab = labels.reshape(1, B_pad)
    # TODO(synk): col_sq could be folded into the kernel (computed from the
    # resident block) to drop this extra (B, D) read; kept in the wrapper for a
    # guaranteed-lowering layout (row norms ARE computed in-kernel).
    featsf = feats.astype(jnp.float32)
    col_sq = jnp.sum(featsf * featsf, axis=1).reshape(1, B_pad)

    lane_bytes = 128 * 4
    vmem_est = (B_pad * D * itemsize               # resident features (single-buffered)
                + 2 * tb * D * itemsize            # anchor-row features (double-buffered)
                + 3 * tb * B_pad * 4               # gram / dist2 / mask temporaries
                + 2 * 8 * B_pad * 4                # col labels + col sq (sublane-padded)
                + 2 * tb * lane_bytes + 2 * tb * lane_bytes)   # row labels + output
    cost = pl.CostEstimate(
        flops=2 * B_pad * B_pad * D + 8 * B_pad * B_pad,
        transcendentals=2 * B_pad,
        bytes_accessed=2 * B_pad * D * itemsize,
    )

    per_row = pl.pallas_call(
        functools.partial(_triplet_kernel, margin=float(margin)),
        out_shape=jax.ShapeDtypeStruct((B_pad, 1), jnp.float32),
        grid=(n_blocks,),
        in_specs=[
            pl.BlockSpec((tb, 1), lambda i: (i, 0)),                 # anchor labels
            pl.BlockSpec((1, B_pad), lambda i: (0, 0),
                         pipeline_mode=pl.Buffered(1)),              # all labels (resident)
            pl.BlockSpec((1, B_pad), lambda i: (0, 0),
                         pipeline_mode=pl.Buffered(1)),              # all sq norms (resident)
            pl.BlockSpec((tb, D), lambda i: (i, 0)),                 # anchor features
            pl.BlockSpec((B_pad, D), lambda i: (0, 0),
                         pipeline_mode=pl.Buffered(1)),              # all features (resident)
        ],
        out_specs=pl.BlockSpec((tb, 1), lambda i: (i, 0)),           # per-row hinge
        compiler_params=pltpu.CompilerParams(
            dimension_semantics=("parallel",),
            vmem_limit_bytes=_vmem_limit_bytes(vmem_est),
        ),
        cost_estimate=cost,
    )(row_lab, col_lab, col_sq, feats, feats)
    return jnp.sum(per_row) * (1.0 / B)


# ---------------------------------------------------------------------------
# CETLossV2 forward: CE (IDLoss when epsilon != 0) + batch-hard triplet loss
# ---------------------------------------------------------------------------
def cet_loss_v2(features, logits, target, *, num_classes, margin=0.3, epsilon=0.0,
                ce_tile_b=256, ce_tile_c=None, tri_tile_b=256):
    ce = id_loss(logits, target, num_classes=num_classes, epsilon=epsilon,
                 tile_b=ce_tile_b, tile_c=ce_tile_c)
    tri = triplet_loss(features, target, margin=margin, tile_b=tri_tile_b)
    return ce + tri


# ---------------------------------------------------------------------------
# Pure-JAX references (mirror the PyTorch modules)
# ---------------------------------------------------------------------------
def _id_loss_ref(logits, labels, *, num_classes, epsilon=0.0):
    one_hot = jax.nn.one_hot(labels, logits.shape[1], dtype=jnp.float32)
    smooth = one_hot * (1.0 - epsilon) + epsilon / float(num_classes)
    log_probs = jax.nn.log_softmax(logits.astype(jnp.float32), axis=1)
    return jnp.mean(-jnp.sum(smooth * log_probs, axis=1))


def _triplet_ref(features, labels, *, margin=0.3):
    x = features.astype(jnp.float32)
    sq = jnp.sum(x * x, axis=1)
    gram = jax.lax.dot_general(
        x, x, (((1,), (1,)), ((), ())), precision=jax.lax.Precision.HIGHEST
    )
    dist = jnp.sqrt(jnp.maximum(sq[:, None] + sq[None, :] - 2.0 * gram, 1e-12))
    same = labels[:, None] == labels[None, :]
    dist_ap = jnp.max(jnp.where(same, dist, -jnp.inf), axis=1)
    dist_an = jnp.min(jnp.where(same, jnp.inf, dist), axis=1)
    return jnp.mean(jnp.maximum(dist_ap - dist_an + margin, 0.0))


def _cet_ref(features, logits, labels, *, num_classes, margin, epsilon):
    return (_id_loss_ref(logits, labels, num_classes=num_classes, epsilon=epsilon)
            + _triplet_ref(features, labels, margin=margin))


if __name__ == "__main__":
    key = jax.random.PRNGKey(0)
    margin = 0.3
    k1, k2, k3, k4, k5, k6 = jax.random.split(key, 6)

    # --- Test 1: small reid batch, label-smoothing (IDLoss) path, f32 ---
    num_classes, batch, feat_dim = 32, 8, 32
    logits = jax.random.normal(k1, (batch, num_classes), dtype=jnp.float32)
    feats = jax.random.normal(k2, (batch, feat_dim), dtype=jnp.float32)
    labels = jnp.array([0, 0, 1, 1, 2, 2, 3, 3], dtype=jnp.int32)

    loss = cet_loss_v2(feats, logits, labels, num_classes=num_classes,
                       margin=margin, epsilon=0.1)
    loss = jax.block_until_ready(loss)
    ref = _cet_ref(feats, logits, labels, num_classes=num_classes,
                   margin=margin, epsilon=0.1)
    # Kernel gram uses default MXU precision (bf16 passes) vs HIGHEST in the ref.
    assert jnp.allclose(loss, ref, atol=2e-3, rtol=2e-3), (loss, ref)

    # --- Test 2: plain CE path (epsilon=0), batch not tile-divisible,
    #             multiple class blocks exercise the online logsumexp ---
    nc2, b2, d2 = 300, 50, 64
    logits2 = jax.random.normal(k3, (b2, nc2), dtype=jnp.float32)
    feats2 = jax.random.normal(k4, (b2, d2), dtype=jnp.float32)
    labels2 = (jnp.arange(b2) % 7).astype(jnp.int32)

    loss2 = cet_loss_v2(feats2, logits2, labels2, num_classes=nc2,
                        margin=margin, epsilon=0.0, ce_tile_c=128)
    loss2 = jax.block_until_ready(loss2)
    ref2 = _cet_ref(feats2, logits2, labels2, num_classes=nc2,
                    margin=margin, epsilon=0.0)
    assert jnp.allclose(loss2, ref2, atol=2e-3, rtol=2e-3), (loss2, ref2)

    # --- Test 3: bf16 inputs (native-bf16 MXU gram, 16-row sublane alignment) ---
    nc3, b3, d3 = 200, 40, 48
    logits3 = jax.random.normal(k5, (b3, nc3), dtype=jnp.bfloat16)
    feats3 = jax.random.normal(k6, (b3, d3), dtype=jnp.bfloat16)
    labels3 = (jnp.arange(b3) % 5).astype(jnp.int32)

    loss3 = cet_loss_v2(feats3, logits3, labels3, num_classes=nc3,
                        margin=margin, epsilon=0.1)
    loss3 = jax.block_until_ready(loss3)
    ref3 = _cet_ref(feats3, logits3, labels3, num_classes=nc3,
                    margin=margin, epsilon=0.1)
    assert jnp.allclose(loss3, ref3, atol=1e-2, rtol=1e-2), (loss3, ref3)

    print("KERNEL_OK")
</pallas_src>

<mosaic_0001>
module attributes {stable_mosaic.version = 11 : i64} {
  func.func @_ce_kernel(%arg0: i32, %arg1: i32, %arg2: memref<8x1xi32, #tpu.memory_space<vmem>>, %arg3: memref<8x128xf32, #tpu.memory_space<vmem>>, %arg4: memref<8x1xf32, #tpu.memory_space<vmem>>, %arg5: memref<8x1xf32, #tpu.memory_space<vmem>>, %arg6: memref<8x1xf32, #tpu.memory_space<vmem>>, %arg7: memref<8x1xf32, #tpu.memory_space<vmem>>, %arg8: memref<8x1xf32, #tpu.memory_space<vmem>>) attributes {dimension_semantics = [#tpu.dimension_semantics<parallel>, #tpu.dimension_semantics<arbitrary>], iteration_bounds = array<i64: 1, 1>, scalar_prefetch = 0 : i64, scratch_operands = 4 : i64, tpu.core_type = #tpu.core_type<tc>, window_params = [{transform_indices = @transform_0, window_bounds = array<i64: 8, 1>}, {transform_indices = @transform_1, window_bounds = array<i64: 8, 128>}, {transform_indices = @transform_2, window_bounds = array<i64: 8, 1>}]} {
    %c0_i32 = arith.constant 0 : i32
    %0 = arith.cmpi eq, %arg1, %c0_i32 : i32
    %1 = arith.extui %0 : i1 to i32
    %c0_i32_0 = arith.constant 0 : i32
    %2 = arith.cmpi ne, %1, %c0_i32_0 : i32
    scf.if %2 {
      %cst_28 = arith.constant -1.000000e+30 : f32
      %48 = vector.broadcast %cst_28 : f32 to vector<8x1xf32>
      %c0_29 = arith.constant 0 : index
      %c0_30 = arith.constant 0 : index
      %49 = vector.load %arg5[%c0_29, %c0_30] : memref<8x1xf32, #tpu.memory_space<vmem>>, vector<8x1xf32>
      tpu.vector_store %arg5[%c0_29, %c0_30], %48 {strides = array<i32>} : memref<8x1xf32, #tpu.memory_space<vmem>>, vector<8x1xf32>,
      %cst_31 = arith.constant 0.000000e+00 : f32
      %50 = vector.broadcast %cst_31 : f32 to vector<8x1xf32>
      %c0_32 = arith.constant 0 : index
      %c0_33 = arith.constant 0 : index
      %51 = vector.load %arg6[%c0_32, %c0_33] : memref<8x1xf32, #tpu.memory_space<vmem>>, vector<8x1xf32>
      tpu.vector_store %arg6[%c0_32, %c0_33], %50 {strides = array<i32>} : memref<8x1xf32, #tpu.memory_space<vmem>>, vector<8x1xf32>,
      %cst_34 = arith.constant 0.000000e+00 : f32
      %52 = vector.broadcast %cst_34 : f32 to vector<8x1xf32>
      %c0_35 = arith.constant 0 : index
      %c0_36 = arith.constant 0 : index
      %53 = vector.load %arg7[%c0_35, %c0_36] : memref<8x1xf32, #tpu.memory_space<vmem>>, vector<8x1xf32>
      tpu.vector_store %arg7[%c0_35, %c0_36], %52 {strides = array<i32>} : memref<8x1xf32, #tpu.memory_space<vmem>>, vector<8x1xf32>,
      %cst_37 = arith.constant 0.000000e+00 : f32
      %54 = vector.broadcast %cst_37 : f32 to vector<8x1xf32>
      %c0_38 = arith.constant 0 : index
      %c0_39 = arith.constant 0 : index
      %55 = vector.load %arg8[%c0_38, %c0_39] : memref<8x1xf32, #tpu.memory_space<vmem>>, vector<8x1xf32>
      tpu.vector_store %arg8[%c0_38, %c0_39], %54 {strides = array<i32>} : memref<8x1xf32, #tpu.memory_space<vmem>>, vector<8x1xf32>,
    } else {
    }
    %c0 = arith.constant 0 : index
    %c0_1 = arith.constant 0 : index
    %3 = vector.load %arg3[%c0, %c0_1] : memref<8x128xf32, #tpu.memory_space<vmem>>, vector<8x128xf32>
    %c0_2 = arith.constant 0 : index
    %c0_3 = arith.constant 0 : index
    %4 = vector.load %arg2[%c0_2, %c0_3] : memref<8x1xi32, #tpu.memory_space<vmem>>, vector<8x1xi32>
    %5 = tpu.iota {dimensions = array<i32: 1>} : vector<8x128xi32>
    %c128_i32 = arith.constant 128 : i32
    %6 = arith.muli %arg1, %c128_i32 : i32
    %7 = vector.broadcast %6 : i32 to vector<8x128xi32>
    %8 = arith.addi %5, %7 : vector<8x128xi32>
    %c32_i32 = arith.constant 32 : i32
    %9 = vector.broadcast %c32_i32 : i32 to vector<8x128xi32>
    %10 = arith.cmpi slt, %8, %9 : vector<8x128xi32>
    %cst = arith.constant -1.000000e+30 : f32
    %11 = vector.broadcast %cst : f32 to vector<8x128xf32>
    %12 = arith.select %10, %3, %11 : vector<8x128xi1>, vector<8x128xf32>
    %cst_4 = arith.constant dense<0xFF800000> : vector<8xf32>
    %13 = vector.multi_reduction <maximumf>, %12, %cst_4 [1] : vector<8x128xf32> to vector<8xf32>
    %14 = vector.shape_cast %13 : vector<8xf32> to vector<8x1xf32>
    %c0_5 = arith.constant 0 : index
    %c0_6 = arith.constant 0 : index
    %15 = vector.load %arg5[%c0_5, %c0_6] : memref<8x1xf32, #tpu.memory_space<vmem>>, vector<8x1xf32>
    %16 = arith.maximumf %15, %14 : vector<8x1xf32>
    %17 = arith.subf %15, %16 : vector<8x1xf32>
    %18 = math.exp %17 : vector<8x1xf32>
    %c0_7 = arith.constant 0 : index
    %c0_8 = arith.constant 0 : index
    %19 = vector.load %arg6[%c0_7, %c0_8] : memref<8x1xf32, #tpu.memory_space<vmem>>, vector<8x1xf32>
    %20 = arith.mulf %19, %18 : vector<8x1xf32>
    %21 = vector.broadcast %16 : vector<8x1xf32> to vector<8x128xf32>
    %22 = arith.subf %12, %21 : vector<8x128xf32>
    %23 = math.exp %22 : vector<8x128xf32>
    %cst_9 = arith.constant dense<0.000000e+00> : vector<8xf32>
    %24 = vector.multi_reduction <add>, %23, %cst_9 [1] : vector<8x128xf32> to vector<8xf32>
    %25 = vector.shape_cast %24 : vector<8xf32> to vector<8x1xf32>
    %26 = arith.addf %20, %25 : vector<8x1xf32>
    %c0_10 = arith.constant 0 : index
    %c0_11 = arith.constant 0 : index
    %27 = vector.load %arg6[%c0_10, %c0_11] : memref<8x1xf32, #tpu.memory_space<vmem>>, vector<8x1xf32>
    tpu.vector_store %arg6[%c0_10, %c0_11], %26 {strides = array<i32>} : memref<8x1xf32, #tpu.memory_space<vmem>>, vector<8x1xf32>,
    %c0_12 = arith.constant 0 : index
    %c0_13 = arith.constant 0 : index
    %28 = vector.load %arg5[%c0_12, %c0_13] : memref<8x1xf32, #tpu.memory_space<vmem>>, vector<8x1xf32>
    tpu.vector_store %arg5[%c0_12, %c0_13], %16 {strides = array<i32>} : memref<8x1xf32, #tpu.memory_space<vmem>>, vector<8x1xf32>,
    %c0_14 = arith.constant 0 : index
    %c0_15 = arith.constant 0 : index
    %29 = vector.load %arg8[%c0_14, %c0_15] : memref<8x1xf32, #tpu.memory_space<vmem>>, vector<8x1xf32>
    %30 = vector.broadcast %4 : vector<8x1xi32> to vector<8x128xi32>
    %31 = arith.cmpi eq, %8, %30 : vector<8x128xi32>
    %cst_16 = arith.constant 0.000000e+00 : f32
    %32 = vector.broadcast %cst_16 : f32 to vector<8x128xf32>
    %33 = arith.select %31, %3, %32 : vector<8x128xi1>, vector<8x128xf32>
    %cst_17 = arith.constant dense<0.000000e+00> : vector<8xf32>
    %34 = vector.multi_reduction <add>, %33, %cst_17 [1] : vector<8x128xf32> to vector<8xf32>
    %35 = vector.shape_cast %34 : vector<8xf32> to vector<8x1xf32>
    %36 = arith.addf %29, %35 : vector<8x1xf32>
    %c0_18 = arith.constant 0 : index
    %c0_19 = arith.constant 0 : index
    %37 = vector.load %arg8[%c0_18, %c0_19] : memref<8x1xf32, #tpu.memory_space<vmem>>, vector<8x1xf32>
    tpu.vector_store %arg8[%c0_18, %c0_19], %36 {strides = array<i32>} : memref<8x1xf32, #tpu.memory_space<vmem>>, vector<8x1xf32>,
    %c0_20 = arith.constant 0 : index
    %c0_21 = arith.constant 0 : index
    %38 = vector.load %arg7[%c0_20, %c0_21] : memref<8x1xf32, #tpu.memory_space<vmem>>, vector<8x1xf32>
    %cst_22 = arith.constant 0.000000e+00 : f32
    %39 = vector.broadcast %cst_22 : f32 to vector<8x128xf32>
    %40 = arith.select %10, %3, %39 : vector<8x128xi1>, vector<8x128xf32>
    %cst_23 = arith.constant dense<0.000000e+00> : vector<8xf32>
    %41 = vector.multi_reduction <add>, %40, %cst_23 [1] : vector<8x128xf32> to vector<8xf32>
    %42 = vector.shape_cast %41 : vector<8xf32> to vector<8x1xf32>
    %43 = arith.addf %38, %42 : vector<8x1xf32>
    %c0_24 = arith.constant 0 : index
    %c0_25 = arith.constant 0 : index
    %44 = vector.load %arg7[%c0_24, %c0_25] : memref<8x1xf32, #tpu.memory_space<vmem>>, vector<8x1xf32>
    tpu.vector_store %arg7[%c0_24, %c0_25], %43 {strides = array<i32>} : memref<8x1xf32, #tpu.memory_space<vmem>>, vector<8x1xf32>,
    %c0_i32_26 = arith.constant 0 : i32
    %45 = arith.cmpi eq, %arg1, %c0_i32_26 : i32
    %46 = arith.extui %45 : i1 to i32
    %c0_i32_27 = arith.constant 0 : i32
    %47 = arith.cmpi ne, %46, %c0_i32_27 : i32
    scf.if %47 {
      %c0_28 = arith.constant 0 : index
      %c0_29 = arith.constant 0 : index
      %48 = vector.load %arg5[%c0_28, %c0_29] : memref<8x1xf32, #tpu.memory_space<vmem>>, vector<8x1xf32>
      %c0_30 = arith.constant 0 : index
      %c0_31 = arith.constant 0 : index
      %49 = vector.load %arg6[%c0_30, %c0_31] : memref<8x1xf32, #tpu.memory_space<vmem>>, vector<8x1xf32>
      %50 = math.log %49 : vector<8x1xf32>
      %51 = arith.addf %48, %50 : vector<8x1xf32>
      %c0_32 = arith.constant 0 : index
      %c0_33 = arith.constant 0 : index
      %52 = vector.load %arg8[%c0_32, %c0_33] : memref<8x1xf32, #tpu.memory_space<vmem>>, vector<8x1xf32>
      %53 = arith.subf %51, %52 : vector<8x1xf32>
      %cst_34 = arith.constant 3.200000e+01 : f32
      %54 = vector.broadcast %cst_34 : f32 to vector<8x1xf32>
      %55 = arith.mulf %54, %51 : vector<8x1xf32>
      %c0_35 = arith.constant 0 : index
      %c0_36 = arith.constant 0 : index
      %56 = vector.load %arg7[%c0_35, %c0_36] : memref<8x1xf32, #tpu.memory_space<vmem>>, vector<8x1xf32>
      %57 = arith.subf %55, %56 : vector<8x1xf32>
      %cst_37 = arith.constant 0.899999976 : f32
      %58 = vector.broadcast %cst_37 : f32 to vector<8x1xf32>
      %59 = arith.mulf %58, %53 : vector<8x1xf32>
      %cst_38 = arith.constant 3.125000e-03 : f32
      %60 = vector.broadcast %cst_38 : f32 to vector<8x1xf32>
      %61 = arith.mulf %60, %57 : vector<8x1xf32>
      %62 = arith.addf %59, %61 : vector<8x1xf32>
      %c0_i32_39 = arith.constant 0 : i32
      %63 = vector.broadcast %c0_i32_39 : i32 to vector<8x1xi32>
      %64 = arith.cmpi sge, %4, %63 : vector<8x1xi32>
      %65 = arith.extui %64 : vector<8x1xi1> to vector<8x1xi32>
      %66 = arith.sitofp %65 : vector<8x1xi32> to vector<8x1xf32>
      %67 = arith.mulf %62, %66 : vector<8x1xf32>
      %c0_40 = arith.constant 0 : index
      %c0_41 = arith.constant 0 : index
      %68 = vector.load %arg4[%c0_40, %c0_41] : memref<8x1xf32, #tpu.memory_space<vmem>>, vector<8x1xf32>
      tpu.vector_store %arg4[%c0_40, %c0_41], %67 {strides = array<i32>} : memref<8x1xf32, #tpu.memory_space<vmem>>, vector<8x1xf32>,
    } else {
    }
    return
  }
  func.func @transform_0(%arg0: i32, %arg1: i32) -> (i32, i32) {
    %c0_i32 = arith.constant 0 : i32
    %c0_i32_0 = arith.constant 0 : i32
    return %arg0, %c0_i32 : i32, i32
  }
  func.func @transform_1(%arg0: i32, %arg1: i32) -> (i32, i32) {
    %c0_i32 = arith.constant 0 : i32
    return %arg0, %arg1 : i32, i32
  }
  func.func @transform_2(%arg0: i32, %arg1: i32) -> (i32, i32) {
    %c0_i32 = arith.constant 0 : i32
    %c0_i32_0 = arith.constant 0 : i32
    return %arg0, %c0_i32 : i32, i32
  }
}

</mosaic_0001>

<bundles_post_ra>
// kernel: tpu_custom_call.1
= control target key start
LH: loop header
LB: loop body
LE: loop exit
PB: predicated region body
PF: predicated region fallthrough
CT: control target
= control target key end

     0   :  { %v22_v0 = vlaneseq  ;;  %vm15_vm0 = vcmask 7168   ;;  %v105_v1 = vmov -1e+30   ;;  %v106_v5 = vmov 0   ;;  %s143_s1 = inlined_call_operand.vmem [shape: f32[8,128], index: 1, kind: input, shape index: {}]   ;;  %s144_s0 = inlined_call_operand.vmem [shape: s32[8,1], index: 0, kind: input, shape index: {}]   ;;  %s145_s2 = inlined_call_operand.vmem [shape: f32[8,1], index: 2, kind: output, shape index: {}]  }
   0x1   :  { %16 = vst.msk [vmem:[#allocation2] sm:$0xff] %vm15_vm0, %v105_v1  ;;  %v20_v2 = vld [vmem:[%s143_s1] sm:$0xff]  ;;  %97 = vset.pattern.permute.xlu0 %v106_v5  ;;  %98 = vset.pattern.permute.xlu1 %v106_v5  ;;  %v107_v6 = vmov 0.0  }
   0x2   :  { %v23_v3 = vand.u32 127, %v22_v0  ;;  %17 = vst.msk [vmem:[#allocation3] sm:$0xff] %vm15_vm0, %v107_v6  ;;  %18 = vst.msk [vmem:[#allocation4] sm:$0xff] %vm15_vm0, %v107_v6  ;;  %v21_v7 = vld [vmem:[%s144_s0] sm:$0xff] }
   0x3   :  { %19 = vst.msk [vmem:[#allocation5] sm:$0xff] %vm15_vm0, %v107_v6  ;;  %54 = vperm.xlu1 %98, %v21_v7   ;;  %vm84_vm2 = vcmp.ge.s32.totalorder %v21_v7, 0 }
   0x4   :  { %vm27_vm1 = vcmp.lt.s32.totalorder %v23_v3, 32  ;;  %v93_v8 = vsel %vm84_vm2, 1.0, %v107_v6 }
   0x5   :  { %v28_v4 = vsel %vm27_vm1, %v20_v2, -1e+30  ;;  %v63_v19 = vsel %vm27_vm1, %v20_v2, 0.0 }
   0x6   :  { %29 = vmax.xlane.f32.xlu0 %v28_v4 }
   0x8   :  { %v31_v9 = vld [vmem:[#allocation2] sm:$0xff] }
   0x9   :  { %v36_v22 = vld [vmem:[#allocation3] sm:$0xff]  ;;  %v62_v29 = vld [vmem:[#allocation4] sm:$0xff] }
   0xa   :  { %v52_v26 = vld [vmem:[#allocation5] sm:$0xff] }
  0x82   :  { %v55_v16 = vpop.permute.xlu1 %54 }
  0x83   :  { %vm56_vm3 = vcmp.eq.s32.totalorder %v23_v3, %v55_v16 }
  0x84   :  { %v57_v18 = vsel %vm56_vm3, %v20_v2, 0.0 }
  0x93   :  { %v30_v10 = vpop.xlane.xlu0 %29 }
  0x94   :  { %v32_v11 = vmax.f32 %v31_v9, %v30_v10 }
  0x96   :  { %v33_v12 = vsub.f32 %v31_v9, %v32_v11  ;;  %51 = vst.msk [vmem:[#allocation2] sm:$0xff] %vm15_vm0, %v32_v11  ;;  %40 = vperm.xlu0 %97, %v32_v11  }
  0x98   :  { %v34_v20 = vmul.f32 1.442695, %v33_v12 }
  0x9d   :  { %v71_v35 = vld [vmem:[#allocation2] sm:$0xff] }
 0x115   :  { %v41_v13 = vpop.permute.xlu0 %40 }
 0x116   :  { %v43_v14 = vsub.f32 %v28_v4, %v41_v13 }
 0x118   :  { %v44_v15 = vmul.f32 1.442695, %v43_v14 }
 0x11a   :  { %99 = vpow2.f32 %v44_v15 }
 0x11b   :  { %101 = vpow2.f32 %v34_v20 }
 0x124   :  { %v100_v17 = vpop.eup %99 }
 0x125   :  { %46 = vadd.xlane.f32.xlu1 %v100_v17  ;;  %v102_v21 = vpop.eup %101 }
 0x126   :  { %v37_v23 = vmul.f32 %v102_v21, %v36_v22 }
 0x129   :  { %58 = vadd.xlane.f32.xlu1 %v57_v18 }
 0x12d   :  { %64 = vadd.xlane.f32.xlu1 %v63_v19 }
 0x1b2   :  { %v47_v24 = vpop.xlane.xlu1 %46 }
 0x1b3   :  { %v48_v25 = vadd.f32 %v47_v24, %v37_v23 }
 0x1b5   :  { %50 = vst.msk [vmem:[#allocation3] sm:$0xff] %vm15_vm0, %v48_v25 }
 0x1b6   :  { %v59_v27 = vpop.xlane.xlu1 %58 }
 0x1b7   :  { %v60_v28 = vadd.f32 %v59_v27, %v52_v26 }
 0x1b9   :  { %61 = vst.msk [vmem:[#allocation5] sm:$0xff] %vm15_vm0, %v60_v28 }
 0x1ba   :  { %v65_v30 = vpop.xlane.xlu1 %64 }
 0x1bb   :  { %v66_v31 = vadd.f32 %v65_v30, %v62_v29 }
 0x1bc   :  { %v72_v32 = vld [vmem:[#allocation3] sm:$0xff] }
 0x1bd   :  { %103 = vlog2.f32 %v72_v32  ;;  %67 = vst.msk [vmem:[#allocation4] sm:$0xff] %vm15_vm0, %v66_v31 }
 0x1c0   :  { %v76_v37 = vld [vmem:[#allocation5] sm:$0xff] }
 0x1c4   :  { %v79_v38 = vld [vmem:[#allocation4] sm:$0xff] }
 0x1c7   :  { %v104_v33 = vpop.eup %103 }
 0x1c8   :  { %v74_v34 = vmul.f32 0.6931472, %v104_v33 }
 0x1ca   :  { %v75_v36 = vadd.f32 %v74_v34, %v71_v35 }
 0x1cc   :  { %v77_v39 = vsub.f32 %v75_v36, %v76_v37  ;;  %v78_v40 = vmul.f32 32.0, %v75_v36 }
 0x1ce   :  { %v80_v41 = vsub.f32 %v78_v40, %v79_v38  ;;  %v81_v42 = vmul.f32 0.9, %v77_v39 }
 0x1d0   :  { %v82_v43 = vmul.f32 0.003125, %v80_v41 }
 0x1d2   :  { %v83_v44 = vadd.f32 %v82_v43, %v81_v42 }
 0x1d4   :  { %v87_v45 = vmul.f32 %v93_v8, %v83_v44 }
 0x1d6   :  { %88 = vst.msk [vmem:[%s145_s2] sm:$0xff] %vm15_vm0, %v87_v45 }

</bundles_post_ra>
